<compile_context>
chip_gen: v7x
topology: tpu7x:2x2x1
jax: 0.10.0
libtpu: 0.0.40
codegen_flags: <defaults>
</compile_context>

<pallas_src>
import functools

import jax
import jax.numpy as jnp
from jax.experimental import pallas as pl
from jax.experimental.pallas import tpu as pltpu

_LANES = 128
_SUBLANES = 8
# ~4 MiB per input block -> ~16 MiB resident with in+out double-buffering.
_TARGET_BLOCK_BYTES = 4 * 1024 * 1024
_VMEM_LIMIT_BYTES = 32 * 1024 * 1024


def _bf16_compute_ok():
    """bf16-native VPU/EUP exists on v6e / v7x; v5e (and older) need f32 compute."""
    try:
        kind = jax.devices()[0].device_kind.lower()
    except Exception:
        return False
    return ("v6" in kind) or ("v7" in kind)


def _act_tracker_kernel(params_ref, x_ref, o_ref, *, compute_dtype):
    # params_ref: SMEM f32 vector [b, tanh(b)] (tanh(b) hoisted out of the grid loop).
    # x_ref / o_ref: VMEM tiles in the input's native dtype.
    b = params_ref[0].astype(compute_dtype)   # explicit cast keeps bf16 path in bf16
    tanh_b = params_ref[1]                    # f32
    x = x_ref[...].astype(compute_dtype)
    t = jnp.tanh(x + b)                       # one EUP tanh per element
    # Subtract in f32: tanh(x+b) ~ tanh(b) for small |x|, so keeping the
    # difference in f32 limits extra cancellation error on the bf16 path.
    o_ref[...] = (t.astype(jnp.float32) - tanh_b).astype(o_ref.dtype)


def _call_tiled(x2d, params, compute_dtype):
    """Main streaming kernel over a lane-dense (rows, 128) slab."""
    rows, _ = x2d.shape
    dtype = x2d.dtype
    itemsize = jnp.dtype(dtype).itemsize
    target_rows = max(
        _SUBLANES,
        (_TARGET_BLOCK_BYTES // (_LANES * itemsize)) // _SUBLANES * _SUBLANES,
    )
    if rows < 2 * _SUBLANES:
        # Tiny input: one full-extent block (non-multiple-of-8 rows are legal
        # when the block spans the whole array).
        block_rows = rows
    else:
        # Never collapse to a single block: keep >= 2 blocks so the "parallel"
        # axis can be sharded across both TensorCores on v7x (v5e/v6e have one
        # TC; the extra grid step is noise).
        half_rows = (-(-((rows + 1) // 2) // _SUBLANES)) * _SUBLANES
        block_rows = min(target_rows, half_rows)
    grid = (pl.cdiv(rows, block_rows),)

    return pl.pallas_call(
        functools.partial(_act_tracker_kernel, compute_dtype=compute_dtype),
        out_shape=jax.ShapeDtypeStruct((rows, _LANES), dtype),
        grid_spec=pltpu.PrefetchScalarGridSpec(
            num_scalar_prefetch=0,
            grid=grid,
            in_specs=[
                pl.BlockSpec(memory_space=pltpu.MemorySpace.SMEM),      # [b, tanh(b)]
                pl.BlockSpec((block_rows, _LANES), lambda i: (i, 0)),   # x tile
            ],
            out_specs=pl.BlockSpec((block_rows, _LANES), lambda i: (i, 0)),
        ),
        compiler_params=pltpu.CompilerParams(
            dimension_semantics=("parallel",),
            vmem_limit_bytes=_VMEM_LIMIT_BYTES,
        ),
    )(params, x2d)


def _call_tail(x_tail, params, compute_dtype):
    """Single-block kernel for a < 128-element ragged tail (rare path)."""
    shape = x_tail.shape   # (1, tail)
    return pl.pallas_call(
        functools.partial(_act_tracker_kernel, compute_dtype=compute_dtype),
        out_shape=jax.ShapeDtypeStruct(shape, x_tail.dtype),
        grid_spec=pltpu.PrefetchScalarGridSpec(
            num_scalar_prefetch=0,
            grid=(1,),
            in_specs=[
                pl.BlockSpec(memory_space=pltpu.MemorySpace.SMEM),
                pl.BlockSpec(shape, lambda i: (0, 0)),   # full-extent block
            ],
            out_specs=pl.BlockSpec(shape, lambda i: (0, 0)),
        ),
        compiler_params=pltpu.CompilerParams(dimension_semantics=("arbitrary",)),
    )(params, x_tail)


def act_tracker_forward(x, b):
    """ActTracker forward: tanh(x + b) - tanh(b).  x: any shape, b: shape (1,)."""
    orig_shape = x.shape
    dtype = x.dtype
    n = x.size

    # bf16-native compute only where a bf16 VPU/EUP exists (v6e/v7x); f32
    # everywhere else (mandatory on v5e).
    compute_dtype = (
        jnp.bfloat16 if (dtype == jnp.bfloat16 and _bf16_compute_ok()) else jnp.float32
    )

    # Scalar parameters for SMEM: [b, tanh(b)] (tanh(b) computed once, not per tile).
    b32 = b.astype(jnp.float32).reshape(())
    params = jnp.stack([b32, jnp.tanh(b32)])

    # Flatten to a lane-dense slab in the NATIVE dtype (zero-copy reshape).
    flat = jnp.reshape(x, (-1,))
    n_main = (n // _LANES) * _LANES
    tail = n - n_main

    out_parts = []
    if n_main:
        rows = n_main // _LANES
        # Common case (tail == 0): pure reshape, no copy.  Ragged case: slice
        # only the 128-aligned prefix instead of padding the whole tensor.
        x_main = flat if tail == 0 else flat[:n_main]
        out_main = _call_tiled(x_main.reshape(rows, _LANES), params, compute_dtype)
        if tail == 0:
            return jnp.reshape(out_main, orig_shape)
        out_parts.append(jnp.reshape(out_main, (-1,)))
    if tail:
        # TODO(synk): the <128-element tail still costs a prefix slice and an
        # output concatenate (one extra HBM pass each); a fully in-kernel
        # ragged path would need manual DMA over a pl.ANY input.
        x_tail = flat[n_main:].reshape(1, tail)
        out_parts.append(jnp.reshape(_call_tail(x_tail, params, compute_dtype), (-1,)))

    out_flat = out_parts[0] if len(out_parts) == 1 else jnp.concatenate(out_parts)
    return jnp.reshape(out_flat, orig_shape)


if __name__ == "__main__":
    key = jax.random.PRNGKey(0)

    # Parameter b: nn.Parameter(torch.zeros(1)) -> shape (1,).  Deterministic,
    # nonzero value to exercise the centering math.
    b = jnp.full((1,), 0.3, dtype=jnp.float32)

    # Case 1: small NCHW f32 input (numel % 128 == 0 -> zero-copy path,
    # 16 rows -> 2 blocks so the parallel axis exercises the megacore split).
    x = jax.random.normal(key, (2, 4, 16, 16), dtype=jnp.float32)
    out = act_tracker_forward(x, b)
    out = jax.block_until_ready(out)
    ref = jnp.tanh(x + b) - jnp.tanh(b)
    assert out.shape == x.shape and out.dtype == x.dtype
    assert jnp.allclose(out, ref, atol=1e-6, rtol=1e-6), "f32 mismatch vs reference"

    # Case 2: awkward bf16 shape (exercises the ragged prefix+tail path and,
    # on v6e/v7x, the bf16-native compute path).
    x_bf16 = jax.random.normal(key, (1, 3, 37, 13), dtype=jnp.bfloat16)
    out_bf16 = act_tracker_forward(x_bf16, b)
    out_bf16 = jax.block_until_ready(out_bf16)
    ref_bf16 = (jnp.tanh(x_bf16.astype(jnp.float32) + b) - jnp.tanh(b)).astype(jnp.bfloat16)
    assert out_bf16.shape == x_bf16.shape and out_bf16.dtype == x_bf16.dtype
    assert jnp.allclose(
        out_bf16.astype(jnp.float32), ref_bf16.astype(jnp.float32), atol=2e-2, rtol=2e-2
    ), "bf16 mismatch vs reference"

    print("KERNEL_OK")
</pallas_src>

<mosaic_0001>
module attributes {stable_mosaic.version = 11 : i64} {
  func.func @_act_tracker_kernel(%arg0: i32, %arg1: memref<2xf32, #tpu.memory_space<smem>>, %arg2: memref<8x128xf32, #tpu.memory_space<vmem>>, %arg3: memref<8x128xf32, #tpu.memory_space<vmem>>) attributes {dimension_semantics = [#tpu.dimension_semantics<parallel>], iteration_bounds = array<i64: 2>, scalar_prefetch = 0 : i64, scratch_operands = 0 : i64, tpu.core_type = #tpu.core_type<tc>, window_params = [{transform_indices = @transform_0, window_bounds = array<i64: 2>}, {transform_indices = @transform_1, window_bounds = array<i64: 8, 128>}, {transform_indices = @transform_2, window_bounds = array<i64: 8, 128>}]} {
    %c0 = arith.constant 0 : index
    %0 = memref.load %arg1[%c0] : memref<2xf32, #tpu.memory_space<smem>>
    %c1 = arith.constant 1 : index
    %1 = memref.load %arg1[%c1] : memref<2xf32, #tpu.memory_space<smem>>
    %c0_0 = arith.constant 0 : index
    %c0_1 = arith.constant 0 : index
    %2 = vector.load %arg2[%c0_0, %c0_1] : memref<8x128xf32, #tpu.memory_space<vmem>>, vector<8x128xf32>
    %3 = vector.broadcast %0 : f32 to vector<8x128xf32>
    %4 = arith.addf %2, %3 : vector<8x128xf32>
    %5 = math.tanh %4 : vector<8x128xf32>
    %6 = vector.broadcast %1 : f32 to vector<8x128xf32>
    %7 = arith.subf %5, %6 : vector<8x128xf32>
    %c0_2 = arith.constant 0 : index
    %c0_3 = arith.constant 0 : index
    %8 = vector.load %arg3[%c0_2, %c0_3] : memref<8x128xf32, #tpu.memory_space<vmem>>, vector<8x128xf32>
    tpu.vector_store %arg3[%c0_2, %c0_3], %7 {strides = array<i32>} : memref<8x128xf32, #tpu.memory_space<vmem>>, vector<8x128xf32>,
    return
  }
  func.func @transform_0(%arg0: i32) -> i32 {
    %c0_i32 = arith.constant 0 : i32
    %c0_i32_0 = arith.constant 0 : i32
    return %c0_i32 : i32
  }
  func.func @transform_1(%arg0: i32) -> (i32, i32) {
    %c0_i32 = arith.constant 0 : i32
    %c0_i32_0 = arith.constant 0 : i32
    return %arg0, %c0_i32 : i32, i32
  }
  func.func @transform_2(%arg0: i32) -> (i32, i32) {
    %c0_i32 = arith.constant 0 : i32
    %c0_i32_0 = arith.constant 0 : i32
    return %arg0, %c0_i32 : i32, i32
  }
}

</mosaic_0001>

<bundles_post_ra>
// kernel: tpu_custom_call.1
= control target key start
LH: loop header
LB: loop body
LE: loop exit
PB: predicated region body
PF: predicated region fallthrough
CT: control target
= control target key end

     0   :  { %7 = vsyncpa [#allocation5], 0  ;;  %s688_s0 = inlined_call_operand.hbm [shape: f32[2], index: 0, kind: input, shape index: {}]   ;;  %s689_s1 = inlined_call_operand.hbm [shape: f32[16,128], index: 1, kind: input, shape index: {}]   ;;  %s690_s2 = inlined_call_operand.hbm [shape: f32[16,128], index: 2, kind: output, shape index: {}]  }
   0x1   :  { %8 = vsyncpa [#allocation3], 0 }
   0x2   :  { %10 = vsyncpa [#allocation3 + $0x1], 0 }
   0x3   :  { %11 = vsyncpa [#allocation4], 0 }
   0x4   :  { %13 = vsyncpa [#allocation4 + $0x1], 0  ;;  %s483_s9 = smov 0   ;;  %s485_s10 = smov 0  }
   0x5   :  { %s487_s11 = smov 0   ;;  %s489_s12 = smov 0  }
   0x6 LB: > { %s504_s13 = sadd.s32 4294967295, %s463_s12   ;;  %s276_s14 = sadd.s32 4294967294, %s463_s12   ;;  %s463_s12 = sphi %s489_s12, %s711_s12   ;;  %s459_s11 = sphi %s487_s11, %s710_s11   ;;  %s455_s10 = sphi %s485_s10, %s709_s10   ;;  %s451_s9 = sphi %s483_s9, %s708_s9  }
   0x7   : > { %p60_p0 = scmp.ne.s32.totalorder %s455_s10, %s451_s9  ;;  %p691_p1 = scmp.eq.s32.totalorder %s504_s13, 0 }
   0x8   : > { %p90_p3 = scmp.eq.s32.totalorder %s276_s14, 1  ;;  %p277_p5 = scmp.ge.s32.totalorder %s463_s12, 1 }
   0x9   : > { %p513_p4 = por %p691_p1, %p60_p0  ;;  %p97_p7 = scmp.lt.s32.totalorder %s463_s12, 3 }
   0xa   : > { %p518_p6 = por %p90_p3, %p60_p0  ;;  %s529_s18 = sadd.s32 1, %s463_s12  }
   0xb   : > { %s694_s15 = scalar_select %p513_p4, 1, 0 }
   0xc   : > { %s695_s16 = scalar_select %p518_p6, 1, 0 }
   0xd   : > { %p523_p8 = pnand %p277_p5, %p97_p7  ;;  %s44_s19 = ssub.s32 %s463_s12, %s529_s18 }
   0xe   : > { %s47_s20 = sadd.s32 1, %s459_s11  ;;  %p542_p12 = scmp.eq.s32.totalorder %s44_s19, 0 }
   0xf   : > { %p299_p10 = pneg %p523_p8  ;;  %p54_p13 = scmp.ne.s32.totalorder %s459_s11, %s455_s10 }
  0x10   : > { %p55_p0 = scmp.eq.s32.totalorder %s463_s12, 0  ;;  %p312_p3 = scmp.lt.s32.totalorder %s463_s12, 2 }
  0x11   : > { %p538_p11 = pnand %p299_p10, %p691_p1  ;;  %s350_s25 = scalar_lea.hbm %s688_s0, 16 }
  0x12   : > { %p351_p5 = scmp.ne.s32.totalorder %s688_s0, %s350_s25  ;;  %p357_p1 = scmp.lt.u32.totalorder %s350_s25, %s688_s0 }
  0x13   : > { %p352_p7 = pneg %p538_p11 }
  0x15   : > { %p353_p10 = pnand %p352_p7, %p351_p5 }
  0x17   : > { %p354_p9 = pneg %p353_p10 }
  0x19   : > { %p359_p2 = pnand %p357_p1, %p354_p9 }
  0x1b   : > { %362 = shalt.err (!%p359_p2)
}
  0x1c   : > { %s465_s30 = smov [#allocation2]   ;;  %p56_p1 = por %p55_p0, %p54_p13 }
  0x1d   : > { %302 = dma.hbm_to_smem (!%p538_p11), %s688_s0, 16, %s465_s30, [#allocation5]  }
  0x1e   : > { %s569_s5 = scalar_select %p542_p12, %s459_s11, %s47_s20  }
  0x1f   : > { %p699_p2 = scmp.eq.s32.totalorder %s504_s13, 1  ;;  %s119_s7 = sand.u32 1, %s459_s11  }
  0x20   : > { %s281_s8 = sshll.u32 %s463_s12, 7  ;;  %s280_s14 = sshll.u32 %s119_s7, 3 }
  0x21   : > { %p581_p9 = por %p699_p2, %p54_p13  ;;  %s590_s23 = scalar_lea.hbm %s689_s1, %s281_s8 }
  0x22   : > { %s123_s20 = scalar_lea.vmem [#allocation6], %s280_s14  ;;  %p594_p11 = pnand %p312_p3, %p56_p1 }
  0x23   : > { %s700_s6 = scalar_select %p581_p9, 1, 0 }
  0x24   : > { %s130_s22 = sshll.u32 %s123_s20, 4  ;;  %s120_s25 = scalar_lea.sflag [#allocation3], %s119_s7  ;;  %s598_s22 = int_to_ptr.vmem [resolvable:$true] %s130_s22 }
  0x25   : > { %s363_s26 = scalar_lea.hbm %s590_s23, 128  ;;  %p365_p13 = pneg %p594_p11 }
  0x26   : > { %p364_p12 = scmp.ne.s32.totalorder %s590_s23, %s363_s26  ;;  %s368_s29 = scalar_lea.hbm %s689_s1, 256 }
  0x27   : > { %p369_p3 = scmp.lt.u32.totalorder %s590_s23, %s689_s1  ;;  %p370_p7 = scmp.lt.u32.totalorder %s368_s29, %s363_s26 }
  0x28   : > { %p366_p0 = pnand %p365_p13, %p364_p12  ;;  %p372_p1 = scmp.lt.u32.totalorder %s363_s26, %s590_s23 }
  0x29   : > { %p371_p10 = por %p370_p7, %p369_p3 }
  0x2a   : > { %p367_p5 = pneg %p366_p0 }
  0x2b   : > { %p373_p2 = por %p372_p1, %p371_p10 }
  0x2d   : > { %p374_p6 = pnand %p373_p2, %p367_p5 }
  0x2f   : > { %377 = shalt.err (!%p374_p6)
}
  0x30   : > { %s378_s4 = scalar_lea.vmem %s598_s22, 128  ;;  %s466_s7 = smov [#allocation6]  }
  0x31   : > { %p379_p12 = scmp.ne.s32.totalorder %s598_s22, %s378_s4  ;;  %s383_s8 = sshll.u32 %s466_s7, 4  ;;  %s384_s8 = int_to_ptr.vmem [resolvable:$false] %s383_s8 }
  0x32   : > { %s385_s14 = scalar_lea.vmem %s384_s8, 256  ;;  %p386_p4 = scmp.lt.s32.totalorder %s598_s22, %s384_s8 }
  0x33   : > { %p381_p0 = pnand %p379_p12, %p365_p13  ;;  %p387_p3 = scmp.lt.s32.totalorder %s385_s14, %s378_s4 }
  0x35   : > { %p382_p9 = pneg %p381_p0  ;;  %p388_p7 = por %p387_p3, %p386_p4 }
  0x37   : > { %p389_p10 = pnand %p388_p7, %p382_p9 }
  0x39   : > { %392 = shalt.err (!%p389_p10)
}
  0x3a   : > { %306 = dma.hbm_to_vmem [thread:$0]  (!%p594_p11), %s590_s23, 128, %s598_s22, %s120_s25  }
  0x3b   : > { %139 = sbr.rel (%p523_p8) target bundleno = 109 (0x6d), region = 28  ;;  %p702_p6 = scmp.eq.s32.totalorder (!%p523_p8), %s504_s13, 0 }
  0x42   : > { %438 = dma.done.wait (%p702_p6), [#allocation5], 16   ;;  %p703_p13 = pmov %p702_p6 }
  0x43   : > { %s632_s19 = sand.u32 1, %s455_s10   ;;  %p704_p4 = scmp.ne.s32.totalorder %s694_s15, 0 }
  0x44   : > { %440 = vsyncadd (%p703_p13), [#allocation5], 4294967280  ;;  %s284_s21 = sshll.u32 %s632_s19, 3  ;;  %s146_s20 = scalar_lea.sflag [#allocation3], %s632_s19 }
  0x45   : > { %s149_s24 = scalar_lea.vmem [#allocation6], %s284_s21 }
  0x46   : > { %442 = dma.done.wait (%p704_p4), %s146_s20, 128  }
  0x47   : > { %444 = vsyncadd (%p704_p4), %s146_s20, 4294967168 }
  0x48   : > { %154 = sfence }
  0x49   : > { %s171_s17 = sld [smem:[#allocation2]]  ;;  %v173_v0 = vld [vmem:[%s149_s24] sm:$0xff]  ;;  %s286_s23 = sld [smem:[#allocation2 + $0x1]] }
  0x4a   : > { %s170_s22 = scalar_lea.vmem [#allocation7], %s284_s21  ;;  %s288_s26 = sshll.u32 %s504_s13, 7 }
  0x4b   : > { %s194_s25 = sshll.u32 %s170_s22, 4  ;;  %s646_s28 = scalar_lea.hbm %s690_s2, %s288_s26  ;;  %s641_s25 = int_to_ptr.vmem [resolvable:$true] %s194_s25 }
  0x4c   : > { %s181_s29 = scalar_lea.sflag [#allocation4], %s632_s19  ;;  %s393_s30 = scalar_lea.vmem %s641_s25, 128 }
  0x4d   : > { %p394_p8 = scmp.ne.s32.totalorder %s641_s25, %s393_s30  ;;  %p705_p9 = scmp.ne.s32.totalorder %s700_s6, 0 }
  0x4e   : > { %s467_s13 = smov [#allocation7]  }
  0x4f   : > { %v174_v1 = vstv %s171_s17  ;;  %v177_v3 = vstv %s286_s23  ;;  %p395_p11 = pnand %p394_p8, %p705_p9  ;;  %s397_s3 = sshll.u32 %s467_s13, 4  ;;  %s398_s3 = int_to_ptr.vmem [resolvable:$false] %s397_s3 }
  0x50   : > { %v175_v2 = vadd.f32 %v174_v1, %v173_v0  ;;  %s399_s4 = scalar_lea.vmem %s398_s3, 256  ;;  %p400_p1 = scmp.lt.s32.totalorder %s641_s25, %s398_s3 }
  0x51   : > { %p396_p5 = pneg %p395_p11  ;;  %p401_p2 = scmp.lt.s32.totalorder %s399_s4, %s393_s30 }
  0x52   : > { %348 = vtanh.f32 %v175_v2 }
  0x53   : > { %p402_p12 = por %p401_p2, %p400_p1 }
  0x55   : > { %p403_p0 = pnand %p402_p12, %p396_p5 }
  0x5c   : > { %v349_v4 = vpop.eup %348 }
  0x5d   : > { %v178_v5 = vsub.f32 %v349_v4, %v177_v3 }
  0x5f   : > { %179 = vst [vmem:[%s170_s22] sm:$0xff] %v178_v5 }
  0x60   : > { %406 = shalt.err (!%p403_p0)
}
  0x61   : > { %s407_s7 = scalar_lea.hbm %s646_s28, 128  ;;  %s411_s19 = scalar_lea.hbm %s690_s2, 256 }
  0x62   : > { %p408_p3 = scmp.ne.s32.totalorder %s646_s28, %s407_s7  ;;  %p412_p6 = scmp.lt.u32.totalorder %s646_s28, %s690_s2 }
  0x63   : > { %p413_p13 = scmp.lt.u32.totalorder %s411_s19, %s407_s7  ;;  %p415_p8 = scmp.lt.u32.totalorder %s407_s7, %s646_s28 }
  0x64   : > { %p409_p7 = pnand %p408_p3, %p705_p9 }
  0x65   : > { %p414_p4 = por %p413_p13, %p412_p6 }
  0x66   : > { %p410_p10 = pneg %p409_p7 }
  0x67   : > { %p416_p11 = por %p415_p8, %p414_p4 }
  0x69   : > { %p417_p5 = pnand %p416_p11, %p410_p10 }
  0x6b   : > { %420 = shalt.err (!%p417_p5)
}
  0x6c   : > { %297 = dma.vmem_to_hbm [thread:$0]  (%p705_p9), %s641_s25, 128, %s646_s28, %s181_s29  }
  0x6d PF: > { %s206_s24 = sand.u32 1, %s451_s9   ;;  %p706_p1 = scmp.ne.s32.totalorder %s695_s16, 0 }
  0x6e   : > { %p707_p2 = scmp.ge.s32.totalorder %s463_s12, 2  ;;  %s207_s17 = scalar_lea.sflag [#allocation4], %s206_s24 }
  0x70   : > { %p308_p12 = pnand %p707_p2, %p706_p1 }
  0x72   : > { %446 = dma.done.wait (!%p308_p12), %s207_s17, 128  }
  0x73   : > { %448 = vsyncadd (!%p308_p12), %s207_s17, 4294967168  ;;  %p16_p0 = scmp.ge.s32.totalorder %s529_s18, 4   ;;  %s708_s9 = smov %s455_s10 }
  0x74   : > { %s709_s10 = smov %s459_s11  ;;  %s710_s11 = smov %s569_s5 }
  0x75   : > { %s711_s12 = smov %s529_s18  ;;  %18 = sbr.rel (!%p16_p0) target bundleno = 6 (0x6), region = 78 }
  0x7c   :  { %212 = vsyncpa [#allocation3], 1 }
  0x7d   :  { %214 = vsyncpa [#allocation3 + $0x1], 1 }
  0x7e   :  { %215 = vsyncpa [#allocation4], 1 }
  0x7f   :  { %217 = vsyncpa [#allocation4 + $0x1], 1 }
  0x80   :  { %218 = vsyncpa [#allocation5], 1 }
  0x81   :  { %220 = vsyncpa [#allocation5 + $0x1], 1 }

</bundles_post_ra>
